<compile_context>
chip_gen: v6e
topology: v6e:2x2x1
jax: 0.10.0
libtpu: 0.0.40
codegen_flags: <defaults>
</compile_context>

<pallas_src>
import math

import jax
import jax.numpy as jnp
from jax.experimental import pallas as pl
from jax.experimental.pallas import tpu as pltpu


def _round_up(x, m):
    return ((x + m - 1) // m) * m


def _choose_tiles(n, tile_n=None, tile_k=None):
    """Pick node-dim tiles: tN (output rows) and tK (contraction dim)."""
    if tile_n is None:
        tile_n = n if n <= 1024 else 256
    if tile_k is None:
        tile_k = n if n <= 1024 else 512
    tile_n = min(tile_n, n)
    tile_k = min(tile_k, n)
    # Padded node count must be a multiple of both tiles.
    n_pad = _round_up(n, tile_n * tile_k // math.gcd(tile_n, tile_k))
    if tile_n < n_pad:
        assert tile_n % 8 == 0, "sublane tile must be a multiple of 8"
    if tile_k < n_pad:
        assert tile_k % 128 == 0, "lane tile must be a multiple of 128"
    return tile_n, tile_k, n_pad


def gcn_kernel(adjt_ref, x_ref, w_ref, b_ref, o_ref, acc_ref):
    # adjt_ref: (tN, tK)   block of pre-transposed adjacency
    # x_ref   : (1, tK, C) block of the current batch element
    # w_ref   : (C, F)
    # b_ref   : (1, F)
    # o_ref   : (1, tN, F)
    # acc_ref : (tN, C) f32 accumulator, resident across the K grid axis
    k = pl.program_id(2)

    @pl.when(k == 0)
    def _():
        acc_ref[...] = jnp.zeros_like(acc_ref)

    # Partial adj^T @ x for this K tile — straight MXU path (no transpose).
    acc_ref[...] += jnp.dot(
        adjt_ref[...], x_ref[0], preferred_element_type=jnp.float32
    )

    @pl.when(k == pl.num_programs(2) - 1)
    def _():
        out = jnp.dot(acc_ref[...], w_ref[...],
                      preferred_element_type=jnp.float32)
        out = out + b_ref[...]          # f32 bias add before the final cast
        o_ref[0] = out.astype(o_ref.dtype)


def gcn_forward(inputs, adj, weights, bias, *,
                tile_n=None, tile_k=None, operand_dtype=None):
    B, N, C = inputs.shape
    F_out = weights.shape[1]
    out_dtype = inputs.dtype

    # One XLA transpose, amortized over all grid steps — kernel sees adj^T.
    adj_t = adj.T

    tN, tK, Np = _choose_tiles(N, tile_n, tile_k)
    if Np != N:
        pad = Np - N
        adj_t = jnp.pad(adj_t, ((0, pad), (0, pad)))
        inputs_p = jnp.pad(inputs, ((0, 0), (0, pad), (0, 0)))
    else:
        inputs_p = inputs

    if operand_dtype is not None:
        # bf16 operands (MXU-native on v6e/v7x); accumulation stays f32.
        adj_t = adj_t.astype(operand_dtype)
        inputs_p = inputs_p.astype(operand_dtype)
        weights = weights.astype(operand_dtype)

    bias2d = bias.reshape(1, F_out).astype(jnp.float32)

    grid = (B, Np // tN, Np // tK)

    itemsize = jnp.dtype(adj_t.dtype).itemsize
    flops = 2 * B * (N * N * C + N * C * F_out)
    bytes_accessed = (B * Np * Np * itemsize            # adj_t streamed per batch
                      + inputs_p.size * itemsize * (Np // tN)
                      + B * Np * F_out * jnp.dtype(out_dtype).itemsize
                      + weights.size * itemsize)

    out = pl.pallas_call(
        gcn_kernel,
        out_shape=jax.ShapeDtypeStruct((B, Np, F_out), out_dtype),
        grid_spec=pltpu.PrefetchScalarGridSpec(
            num_scalar_prefetch=0,
            grid=grid,
            in_specs=[
                pl.BlockSpec((tN, tK), lambda b, n, k: (n, k)),
                pl.BlockSpec((1, tK, C), lambda b, n, k: (b, k, 0)),
                pl.BlockSpec((C, F_out), lambda b, n, k: (0, 0)),
                pl.BlockSpec((1, F_out), lambda b, n, k: (0, 0)),
            ],
            out_specs=pl.BlockSpec((1, tN, F_out), lambda b, n, k: (b, n, 0)),
            scratch_shapes=[pltpu.VMEM((tN, C), jnp.float32)],
        ),
        compiler_params=pltpu.CompilerParams(
            dimension_semantics=("parallel", "parallel", "arbitrary"),
            vmem_limit_bytes=48 * 1024 * 1024,
        ),
        cost_estimate=pl.CostEstimate(
            flops=flops, transcendentals=0, bytes_accessed=bytes_accessed),
    )(adj_t, inputs_p, weights, bias2d)

    if Np != N:
        out = out[:, :N, :]
    return out


def gcn_reference(inputs, adj, weights, bias):
    # Pure-JAX reference mirroring the PyTorch forward exactly.
    B, N, C = inputs.shape
    inputs_res = jnp.transpose(inputs, (0, 2, 1)).reshape(-1, N)            # (B*C, N)
    inputs_mul = jnp.transpose((inputs_res @ adj).reshape(B, C, N),
                               (0, 2, 1))                                   # (B, N, C)
    out = (inputs_mul.reshape(-1, C) @ weights).reshape(B, N, -1)
    return out + bias


if __name__ == "__main__":
    key = jax.random.PRNGKey(0)

    # --- Test 1: small shapes matching the module (single-tile fast path) ---
    B, N, in_dim, out_dim = 2, 16, 8, 32
    k_x, k_adj, k_w, k_b = jax.random.split(key, 4)
    inputs = jax.random.normal(k_x, (B, N, in_dim), dtype=jnp.float32)
    adj = jax.random.normal(k_adj, (N, N), dtype=jnp.float32)
    weights = jax.random.normal(k_w, (in_dim, out_dim), dtype=jnp.float32) * 0.1
    bias = jax.random.normal(k_b, (out_dim,), dtype=jnp.float32) * 0.1

    out = gcn_forward(inputs, adj, weights, bias)
    out = jax.block_until_ready(out)
    ref = gcn_reference(inputs, adj, weights, bias)
    assert out.shape == (B, N, out_dim)
    assert jnp.allclose(out, ref, atol=1e-4, rtol=1e-4)

    # --- Test 2: multi-tile accumulation path (no padding) ---
    B2, N2, C2, F2 = 2, 384, 8, 32
    k_x2, k_adj2 = jax.random.split(jax.random.PRNGKey(1), 2)
    x2 = jax.random.normal(k_x2, (B2, N2, C2), dtype=jnp.float32)
    adj2 = jax.random.normal(k_adj2, (N2, N2), dtype=jnp.float32) * 0.05
    w2 = jax.random.normal(k_w, (C2, F2), dtype=jnp.float32) * 0.1
    b2 = jax.random.normal(k_b, (F2,), dtype=jnp.float32) * 0.1
    out2 = jax.block_until_ready(
        gcn_forward(x2, adj2, w2, b2, tile_n=128, tile_k=128))
    ref2 = gcn_reference(x2, adj2, w2, b2)
    assert jnp.allclose(out2, ref2, atol=1e-3, rtol=1e-3)

    # --- Test 3: tiled path with node-dim padding ---
    B3, N3, C3, F3 = 1, 200, 16, 64
    k_x3, k_adj3 = jax.random.split(jax.random.PRNGKey(2), 2)
    x3 = jax.random.normal(k_x3, (B3, N3, C3), dtype=jnp.float32)
    adj3 = jax.random.normal(k_adj3, (N3, N3), dtype=jnp.float32) * 0.05
    w3 = jax.random.normal(k_w, (C3, F3), dtype=jnp.float32) * 0.1
    b3 = jax.random.normal(k_b, (F3,), dtype=jnp.float32) * 0.1
    out3 = jax.block_until_ready(
        gcn_forward(x3, adj3, w3, b3, tile_n=64, tile_k=128))
    ref3 = gcn_reference(x3, adj3, w3, b3)
    assert out3.shape == (B3, N3, F3)
    assert jnp.allclose(out3, ref3, atol=1e-3, rtol=1e-3)

    print("KERNEL_OK")
</pallas_src>

<mosaic_0001>
module attributes {stable_mosaic.version = 11 : i64} {
  func.func @gcn_kernel(%arg0: i32, %arg1: i32, %arg2: i32, %arg3: memref<16x16xf32, #tpu.memory_space<vmem>>, %arg4: memref<1x16x8xf32, #tpu.memory_space<vmem>>, %arg5: memref<8x32xf32, #tpu.memory_space<vmem>>, %arg6: memref<1x32xf32, #tpu.memory_space<vmem>>, %arg7: memref<1x16x32xf32, #tpu.memory_space<vmem>>, %arg8: memref<16x8xf32, #tpu.memory_space<vmem>>) attributes {dimension_semantics = [#tpu.dimension_semantics<parallel>, #tpu.dimension_semantics<parallel>, #tpu.dimension_semantics<arbitrary>], iteration_bounds = array<i64: 2, 1, 1>, scalar_prefetch = 0 : i64, scratch_operands = 1 : i64, tpu.core_type = #tpu.core_type<tc>, window_params = [{transform_indices = @transform_0, window_bounds = array<i64: 16, 16>}, {transform_indices = @transform_1, window_bounds = array<i64: 1, 16, 8>}, {pipeline_mode = #tpu.pipeline_mode<synchronous>, transform_indices = @transform_2, window_bounds = array<i64: 8, 32>}, {pipeline_mode = #tpu.pipeline_mode<synchronous>, transform_indices = @transform_3, window_bounds = array<i64: 1, 32>}, {transform_indices = @transform_4, window_bounds = array<i64: 1, 16, 32>}]} {
    %c0_i32 = arith.constant 0 : i32
    %0 = arith.cmpi eq, %arg2, %c0_i32 : i32
    %1 = arith.extui %0 : i1 to i32
    %c0_i32_0 = arith.constant 0 : i32
    %2 = arith.cmpi ne, %1, %c0_i32_0 : i32
    scf.if %2 {
      %cst_11 = arith.constant 0.000000e+00 : f32
      %13 = vector.broadcast %cst_11 : f32 to vector<16x8xf32>
      %c0_12 = arith.constant 0 : index
      %c0_13 = arith.constant 0 : index
      %14 = vector.load %arg8[%c0_12, %c0_13] : memref<16x8xf32, #tpu.memory_space<vmem>>, vector<16x8xf32>
      tpu.vector_store %arg8[%c0_12, %c0_13], %13 {strides = array<i32>} : memref<16x8xf32, #tpu.memory_space<vmem>>, vector<16x8xf32>,
    } else {
    }
    %c0 = arith.constant 0 : index
    %c0_1 = arith.constant 0 : index
    %3 = vector.load %arg8[%c0, %c0_1] : memref<16x8xf32, #tpu.memory_space<vmem>>, vector<16x8xf32>
    %c0_2 = arith.constant 0 : index
    %c0_3 = arith.constant 0 : index
    %4 = vector.load %arg3[%c0_2, %c0_3] : memref<16x16xf32, #tpu.memory_space<vmem>>, vector<16x16xf32>
    %c0_4 = arith.constant 0 : index
    %c0_5 = arith.constant 0 : index
    %c0_6 = arith.constant 0 : index
    %5 = vector.load %arg4[%c0_4, %c0_5, %c0_6] : memref<1x16x8xf32, #tpu.memory_space<vmem>>, vector<1x16x8xf32>
    %6 = vector.shape_cast %5 : vector<1x16x8xf32> to vector<16x8xf32>
    %cst = arith.constant dense<0.000000e+00> : vector<16x8xf32>
    %7 = tpu.matmul %4, %6, %cst {dimension_numbers = #tpu.dot_dimension_numbers<[1], [0], [0], [1], [0, 0, 1, 1], [], []>} : vector<16x16xf32>, vector<16x8xf32>, vector<16x8xf32> -> vector<16x8xf32>
    %8 = arith.addf %3, %7 : vector<16x8xf32>
    %c0_7 = arith.constant 0 : index
    %c0_8 = arith.constant 0 : index
    %9 = vector.load %arg8[%c0_7, %c0_8] : memref<16x8xf32, #tpu.memory_space<vmem>>, vector<16x8xf32>
    tpu.vector_store %arg8[%c0_7, %c0_8], %8 {strides = array<i32>} : memref<16x8xf32, #tpu.memory_space<vmem>>, vector<16x8xf32>,
    %c0_i32_9 = arith.constant 0 : i32
    %10 = arith.cmpi eq, %arg2, %c0_i32_9 : i32
    %11 = arith.extui %10 : i1 to i32
    %c0_i32_10 = arith.constant 0 : i32
    %12 = arith.cmpi ne, %11, %c0_i32_10 : i32
    scf.if %12 {
      %c0_11 = arith.constant 0 : index
      %c0_12 = arith.constant 0 : index
      %13 = vector.load %arg8[%c0_11, %c0_12] : memref<16x8xf32, #tpu.memory_space<vmem>>, vector<16x8xf32>
      %c0_13 = arith.constant 0 : index
      %c0_14 = arith.constant 0 : index
      %14 = vector.load %arg5[%c0_13, %c0_14] : memref<8x32xf32, #tpu.memory_space<vmem>>, vector<8x32xf32>
      %cst_15 = arith.constant dense<0.000000e+00> : vector<16x32xf32>
      %15 = tpu.matmul %13, %14, %cst_15 {dimension_numbers = #tpu.dot_dimension_numbers<[1], [0], [0], [1], [0, 0, 1, 1], [], []>} : vector<16x8xf32>, vector<8x32xf32>, vector<16x32xf32> -> vector<16x32xf32>
      %c0_16 = arith.constant 0 : index
      %c0_17 = arith.constant 0 : index
      %16 = vector.load %arg6[%c0_16, %c0_17] : memref<1x32xf32, #tpu.memory_space<vmem>>, vector<1x32xf32>
      %17 = vector.broadcast %16 : vector<1x32xf32> to vector<16x32xf32>
      %18 = arith.addf %15, %17 : vector<16x32xf32>
      %c0_18 = arith.constant 0 : index
      %c0_19 = arith.constant 0 : index
      %c0_20 = arith.constant 0 : index
      %19 = vector.load %arg7[%c0_18, %c0_19, %c0_20] : memref<1x16x32xf32, #tpu.memory_space<vmem>>, vector<1x16x32xf32>
      %20 = vector.shape_cast %19 : vector<1x16x32xf32> to vector<16x32xf32>
      %21 = vector.shape_cast %18 : vector<16x32xf32> to vector<1x16x32xf32>
      tpu.vector_store %arg7[%c0_18, %c0_19, %c0_20], %21 {strides = array<i32>} : memref<1x16x32xf32, #tpu.memory_space<vmem>>, vector<1x16x32xf32>,
    } else {
    }
    return
  }
  func.func @transform_0(%arg0: i32, %arg1: i32, %arg2: i32) -> (i32, i32) {
    %c0_i32 = arith.constant 0 : i32
    return %arg1, %arg2 : i32, i32
  }
  func.func @transform_1(%arg0: i32, %arg1: i32, %arg2: i32) -> (i32, i32, i32) {
    %c0_i32 = arith.constant 0 : i32
    %c0_i32_0 = arith.constant 0 : i32
    return %arg0, %arg2, %c0_i32 : i32, i32, i32
  }
  func.func @transform_2(%arg0: i32, %arg1: i32, %arg2: i32) -> (i32, i32) {
    %c0_i32 = arith.constant 0 : i32
    %c0_i32_0 = arith.constant 0 : i32
    %c0_i32_1 = arith.constant 0 : i32
    return %c0_i32, %c0_i32_0 : i32, i32
  }
  func.func @transform_3(%arg0: i32, %arg1: i32, %arg2: i32) -> (i32, i32) {
    %c0_i32 = arith.constant 0 : i32
    %c0_i32_0 = arith.constant 0 : i32
    %c0_i32_1 = arith.constant 0 : i32
    return %c0_i32, %c0_i32_0 : i32, i32
  }
  func.func @transform_4(%arg0: i32, %arg1: i32, %arg2: i32) -> (i32, i32, i32) {
    %c0_i32 = arith.constant 0 : i32
    %c0_i32_0 = arith.constant 0 : i32
    return %arg0, %arg1, %c0_i32 : i32, i32, i32
  }
}

</mosaic_0001>

<bundles_post_ra>
// kernel: tpu_custom_call.1
= control target key start
LH: loop header
LB: loop body
LE: loop exit
PB: predicated region body
PF: predicated region fallthrough
CT: control target
= control target key end

     0   :  { %9 = vsyncpa [#allocation4], 0  ;;  %s919_s0 = inlined_call_operand.vmem [shape: f32[16,16], index: 0, kind: input, shape index: {}]   ;;  %s920_s1 = inlined_call_operand.vmem [shape: f32[2,16,8], index: 1, kind: input, shape index: {}]   ;;  %s921_s2 = inlined_call_operand.vmem [shape: f32[8,32], index: 2, kind: input, shape index: {}]   ;;  %s922_s3 = inlined_call_operand.vmem [shape: f32[1,32], index: 3, kind: input, shape index: {}]   ;;  %s923_s4 = inlined_call_operand.hbm [shape: f32[2,16,32], index: 4, kind: output, shape index: {}]  }
   0x1   :  { %11 = vsyncpa [#allocation4 + $0x1], 0  ;;  %s785_s15 = smov 0   ;;  %s787_s16 = smov 0  }
   0x2   :  { %s789_s17 = smov 0   ;;  %s791_s18 = smov 0  }
   0x3   :  { %s793_s19 = smov 0   ;;  %s795_s20 = smov 0  }
   0x4 LB: > { %s580_s21 = sadd.s32 4294967295, %s754_s20   ;;  %s581_s22 = sadd.s32 4294967294, %s754_s20   ;;  %s754_s20 = sphi %s795_s20, %s17_s20   ;;  %s750_s19 = sphi %s793_s19, %s930_s19   ;;  %s746_s18 = sphi %s791_s18, %s929_s18   ;;  %s742_s17 = sphi %s789_s17, %s928_s17   ;;  %s738_s16 = sphi %s787_s16, %s927_s16   ;;  %s734_s15 = sphi %s785_s15, %s926_s15  }
   0x5   : > { %s36_s23 = sadd.s32 1, %s750_s19  ;;  %s143_s24 = sadd.s32 1, %s742_s17 }
   0x6   : > { %p38_p0 = scmp.ge.s32.totalorder %s36_s23, 2  ;;  %p153_p1 = scmp.ne.s32.totalorder %s742_s17, %s738_s16 }
   0x7   : > { %p154_p2 = scmp.eq.s32.totalorder %s580_s21, 1  ;;  %p159_p3 = scmp.ne.s32.totalorder %s738_s16, %s734_s15 }
   0x8   : > { %s932_s23 = smov (%p38_p0, %s36_s23), 0  ;;  %p160_p5 = scmp.eq.s32.totalorder %s581_s22, 1 }
   0x9   : > { %p825_p4 = por %p154_p2, %p153_p1  ;;  %s138_s26 = ssub.s32 %s750_s19, %s932_s23 }
   0xa   : > { %p585_p6 = scmp.ge.s32.totalorder %s754_s20, 1  ;;  %p141_p7 = scmp.eq.s32.totalorder %s138_s26, 0 }
   0xb   : > { %p832_p8 = por %p160_p5, %p159_p3  ;;  %p209_p9 = scmp.lt.s32.totalorder %s754_s20, 3 }
   0xc   : > { %s838_s28 = scalar_select %p141_p7, %s742_s17, %s143_s24  }
   0xd   : > { %p210_p10 = pnand %p585_p6, %p209_p9 }
   0xe   : > { %p257_p11 = scmp.lt.s32.totalorder (!%p210_p10), %s746_s18, 1  ;;  %s244_s14 = sand.u32 (!%p210_p10), 1, %s738_s16  }
   0xf   : > { %213 = sbr.rel (%p210_p10) target bundleno = 446 (0x1be), region = 36  ;;  %s586_s21 = sshll.u32 (!%p210_p10), %s244_s14, 4 }
  0x10   : > { %s246_s26 = scalar_lea.vmem (!%p210_p10), [#allocation3], %s586_s21  ;;  %s600_s30 = sshll.u32 (!%p210_p10), %s746_s18, 8 }
  0x11   : > { %s480_s29 = sshll.u32 (!%p210_p10), %s246_s26, 4  ;;  %s872_s7 = scalar_lea.hbm (!%p210_p10), %s923_s4, %s600_s30  ;;  %s867_s29 = int_to_ptr.vmem [resolvable:$true] %s480_s29 }
  0x12   : > { %s874_s8 = scalar_lea.sflag (!%p210_p10), [#allocation4], %s244_s14 }
  0x14   : > { %v276_v0 = vld [vmem:[%s919_s0] sm:$0xff]  ;;  %vm280_vm0 = vcmask 130048   ;;  %vm271_vm1 = vcmask 64512   ;;  %v756_v1 = vmov 0.0   ;;  %s258_s5 = scalar_select %p257_p11, %s746_s18, 1  ;;  %v277_v4 = vld [vmem:[%s919_s0 + $0x8] sm:$0xff] }
  0x15   : > { %612 = vmatprep.mubr.msk.f32.mxu0 %vm280_vm0, %v276_v0  ;;  %273 = vst.msk [vmem:[#allocation2 + $0x8] sm:$0xff] %vm271_vm1, %v756_v1  ;;  %272 = vst.msk [vmem:[#allocation2] sm:$0xff] %vm271_vm1, %v756_v1  ;;  %v372_v5 = vld [vmem:[%s921_s2] sm:$0xff]  ;;  %vm461_vm2 = vcmask 261120   ;;  %s678_s18 = scalar_lea.vmem %s867_s29, 256 }
  0x16   : > { %s599_s6 = sshll.u32 %s258_s5, 4  ;;  %615 = vmatprep.subr.mxu1 %v372_v5  ;;  %v591_v14 = vld [vmem:[%s922_s3] ss:$0 sm:$0xff]  ;;  %p679_p12 = scmp.ne.s32.totalorder %s867_s29, %s678_s18 }
  0x17   : > { %s264_s9 = scalar_lea.vmem %s920_s1, %s599_s6  ;;  %616 = vmatpush3.msra.mxu1 %v372_v5 }
  0x18   : > { %v279_v2 = vld [vmem:[%s264_s9 + $0x8] sm:$0xff]  ;;  %v278_v3 = vld [vmem:[%s264_s9] sm:$0xff]  ;;  %p680_p13 = pnand %p679_p12, %p825_p4  ;;  %s757_s9 = smov [#allocation3]  }
  0x19   : > { %608 = vmatprep.subr.mxu0 %v279_v2  ;;  %s682_s10 = sshll.u32 %s757_s9, 4  ;;  %s683_s10 = int_to_ptr.vmem [resolvable:$false] %s682_s10 }
  0x1a   : > { %609 = vmatpush3.msra.mxu0 %v279_v2  ;;  %p681_p0 = pneg %p680_p13  ;;  %s684_s11 = scalar_lea.vmem %s683_s10, 512 }
  0x1b   : > { %610 = vmatprep.subr.mxu0 %v278_v3  ;;  %p685_p1 = scmp.lt.s32.totalorder %s867_s29, %s683_s10  ;;  %p686_p2 = scmp.lt.s32.totalorder %s684_s11, %s678_s18 }
  0x1c   : > { %611 = vmatpush3.msra.mxu0 %v278_v3  ;;  %v275_v6 = vld [vmem:[#allocation2 + $0x8] sm:$0xff]  ;;  %v274_v8 = vld [vmem:[#allocation2] sm:$0xff] }
  0x1d   : > { %613 = vmatmul.mubr.msk.f32.vlgmr.msra.gmra.mxu0 %vm280_vm0, %v277_v4  ;;  %p687_p3 = por %p686_p2, %p685_p1 }
  0x1f   : > { %p688_p5 = pnand %p687_p3, %p681_p0 }
  0xdd   : > { %v614_v7 = vpop.f32.mrf.mxu0 }
  0xde   : > { %v363_v9 = vadd.f32 %v614_v7, %v275_v6 }
  0xdf   : > { %v353_v10 = vpop.f32.mrf.mxu0 }
  0xe0   : > { %366 = vst.msk [vmem:[#allocation2 + $0x8] sm:$0xff] %vm271_vm1, %v363_v9  ;;  %v362_v11 = vadd.f32 %v353_v10, %v274_v8 }
  0xe2   : > { %365 = vst.msk [vmem:[#allocation2] sm:$0xff] %vm271_vm1, %v362_v11 }
  0xe7   : > { %v371_v13 = vld [vmem:[#allocation2 + $0x8] sm:$0xff] }
  0xe9   : > { %v370_v12 = vld [vmem:[#allocation2] sm:$0xff] }
  0xea   : > { %617 = vmatprep.mubr.msk.f32.mxu1 %vm271_vm1, %v370_v12 }
  0xeb   : > { %618 = vmatmul.mubr.msk.f32.vlgmr.msra.gmra.mxu1 %vm271_vm1, %v371_v13 }
 0x1ab   : > { %v619_v15 = vpop.f32.mrf.mxu1 }
 0x1ac   : > { %v458_v16 = vadd.f32 %v619_v15, %v591_v14 }
 0x1ad   : > { %v452_v17 = vpop.f32.mrf.mxu1 }
 0x1ae   : > { %463 = vst.msk [vmem:[%s246_s26 + $0x8] sm:$0xff] %vm461_vm2, %v458_v16  ;;  %v453_v18 = vadd.f32 %v591_v14, %v452_v17 }
 0x1b0   : > { %462 = vst.msk [vmem:[%s246_s26] sm:$0xff] %vm461_vm2, %v453_v18 }
 0x1b1   : > { %691 = shalt.err (!%p688_p5)
}
 0x1b2   : > { %s692_s12 = scalar_lea.hbm %s872_s7, 256  ;;  %s696_s21 = scalar_lea.hbm %s923_s4, 512 }
 0x1b3   : > { %p693_p6 = scmp.ne.s32.totalorder %s872_s7, %s692_s12  ;;  %p697_p10 = scmp.lt.s32.totalorder %s872_s7, %s923_s4 }
 0x1b4   : > { %p698_p11 = scmp.lt.s32.totalorder %s696_s21, %s692_s12 }
 0x1b5   : > { %p694_p7 = pnand %p693_p6, %p825_p4 }
 0x1b6   : > { %p699_p12 = por %p698_p11, %p697_p10 }
 0x1b7   : > { %p695_p9 = pneg %p694_p7 }
 0x1b9   : > { %p700_p13 = pnand %p699_p12, %p695_p9 }
 0x1bb   : > { %703 = shalt.err (!%p700_p13)
}
 0x1bc   : > { %s758_s26 = smov 128   ;;  %s759_s30 = smov 8  }
 0x1bd   : > { %620 = dma.vmem_to_hbm [thread:$0]  (%p825_p4), %s867_s29, 256, %s872_s7, %s874_s8, %s758_s26, %s758_s26, %s759_s30  }
 0x1be PF: > { %p626_p0 = scmp.ge.s32.totalorder %s754_s20, 2  ;;  %s495_s5 = sand.u32 1, %s734_s15  }
 0x1bf   : > { %s496_s6 = scalar_lea.sflag [#allocation4], %s495_s5 }
 0x1c0   : > { %p623_p1 = pnand %p626_p0, %p832_p8 }
 0x1c2   : > { %p624_p2 = pneg %p623_p1 }
 0x1c4   : > { %729 = dma.done.wait (%p624_p2), %s496_s6, 256  }
 0x1c5   : > { %731 = vsyncadd (%p624_p2), %s496_s6, 4294967040  ;;  %s17_s20 = sadd.s32 1, %s754_s20   ;;  %s926_s15 = smov %s738_s16 }
 0x1c6   : > { %p14_p3 = scmp.ge.s32.totalorder %s17_s20, 4   ;;  %s927_s16 = smov %s742_s17 }
 0x1c7   : > { %s928_s17 = smov %s838_s28  ;;  %s929_s18 = smov %s750_s19 }
 0x1c8   : > { %s930_s19 = smov %s932_s23  ;;  %16 = sbr.rel (!%p14_p3) target bundleno = 4 (0x4), region = 82 }
 0x1cd   :  { %501 = vsyncpa [#allocation4], 1 }
 0x1ce   :  { %503 = vsyncpa [#allocation4 + $0x1], 1 }

</bundles_post_ra>
